<compile_context>
chip_gen: v7x
topology: tpu7x:2x2x1
jax: 0.10.0
libtpu: 0.0.40
codegen_flags: <defaults>
</compile_context>

<pallas_src>
import functools

import jax
import jax.numpy as jnp
from jax.experimental import pallas as pl
from jax.experimental.pallas import tpu as pltpu


# ----------------------------------------------------------------------------
# Budgets / tile helpers
# ----------------------------------------------------------------------------
_VMEM_BUDGET = 12 * 1024 * 1024          # conservative, < every default scoped VMEM limit
_WEIGHT_RESIDENT_BYTES = 4 * 1024 * 1024  # keep the whole bf16 weight resident when <= this
_FUSE_LN_MAX_DIM = 2048                   # fuse LN into the matmul when dim fits one K block


def _pick_divisor(n, prefs):
    """Largest preferred tile that divides n; fall back to the full extent."""
    for p in prefs:
        if n % p == 0:
            return p
    return n


def _row_tile(m, row_bytes, budget):
    """Largest row tile (multiple of 8) that (a) fits the double-buffered VMEM
    budget, (b) does not exceed m, and (c) leaves >= 2 M-blocks when m is large
    enough so megacore 'parallel' sharding has work on both cores."""
    budget = max(budget, 1)
    cap = m if m <= 8 else max(8, (m + 1) // 2)
    for p in (512, 256, 128, 64, 32, 16, 8):
        if p <= cap and 2 * p * row_bytes <= budget:
            return p
    return max(1, min(m, 8))


# ----------------------------------------------------------------------------
# Standalone LayerNorm kernel (non-fused path; out_dtype selectable -> bf16)
# ----------------------------------------------------------------------------
def _layernorm_kernel(x_ref, g_ref, b_ref, o_ref, *, eps):
    x = x_ref[...].astype(jnp.float32)                 # (bm, dim)
    mu = jnp.mean(x, axis=-1, keepdims=True)
    xc = x - mu
    var = jnp.mean(xc * xc, axis=-1, keepdims=True)
    y = xc * jax.lax.rsqrt(var + eps) * g_ref[...] + b_ref[...]
    o_ref[...] = y.astype(o_ref.dtype)


def pallas_layernorm(x, gamma, beta, eps=1e-5, out_dtype=None):
    """LayerNorm over the last dim of x (any leading shape)."""
    shape = x.shape
    dim = shape[-1]
    out_dtype = x.dtype if out_dtype is None else out_dtype
    x2 = x.reshape(-1, dim)
    m = x2.shape[0]
    row_bytes = dim * (x2.dtype.itemsize + jnp.dtype(out_dtype).itemsize)
    bm = _row_tile(m, row_bytes, _VMEM_BUDGET)
    out = pl.pallas_call(
        functools.partial(_layernorm_kernel, eps=eps),
        out_shape=jax.ShapeDtypeStruct((m, dim), out_dtype),
        grid=(pl.cdiv(m, bm),),
        in_specs=[
            pl.BlockSpec((bm, dim), lambda i: (i, 0)),
            pl.BlockSpec((1, dim), lambda i: (0, 0)),
            pl.BlockSpec((1, dim), lambda i: (0, 0)),
        ],
        out_specs=pl.BlockSpec((bm, dim), lambda i: (i, 0)),
        compiler_params=pltpu.CompilerParams(dimension_semantics=("parallel",)),
    )(x2,
      gamma.reshape(1, dim).astype(jnp.float32),
      beta.reshape(1, dim).astype(jnp.float32))
    return out.reshape(shape)


# ----------------------------------------------------------------------------
# Fused LayerNorm + Linear (+bias +activation) kernel  -- the PreNorm fast path
# ----------------------------------------------------------------------------
def _ln_linear_kernel(*refs, eps, activation, has_bias):
    if has_bias:
        x_ref, g_ref, beta_ref, w_ref, bias_ref, o_ref = refs
    else:
        x_ref, g_ref, beta_ref, w_ref, o_ref = refs
        bias_ref = None
    # LayerNorm prologue in f32 on the (bm, dim) x-tile.
    x = x_ref[...].astype(jnp.float32)
    mu = jnp.mean(x, axis=-1, keepdims=True)
    xc = x - mu
    var = jnp.mean(xc * xc, axis=-1, keepdims=True)
    y = xc * jax.lax.rsqrt(var + eps) * g_ref[...] + beta_ref[...]
    # MXU matmul: bf16 operands, f32 accumulation.
    r = jnp.dot(y.astype(w_ref.dtype), w_ref[...],
                preferred_element_type=jnp.float32)
    if has_bias:
        r = r + bias_ref[...]
    if activation == "gelu":
        r = jax.nn.gelu(r, approximate=True)
    o_ref[...] = r.astype(o_ref.dtype)


def pallas_ln_linear(x, gamma, beta, w, b=None, *, eps=1e-5,
                     activation="none", out_dtype=jnp.float32):
    """act(LayerNorm(x) @ w + b) fully fused; requires the feature dim to fit
    one K block (dim <= _FUSE_LN_MAX_DIM)."""
    shape = x.shape
    dim = shape[-1]
    k, n = w.shape
    assert k == dim
    x2 = x.reshape(-1, dim)
    m = x2.shape[0]
    w_bf = w if w.dtype == jnp.bfloat16 else w.astype(jnp.bfloat16)

    # Weight resident (single N block) when it fits, else lane-dense N tiles.
    w_bytes = dim * n * 2
    bn = n if w_bytes <= _WEIGHT_RESIDENT_BYTES else _pick_divisor(n, (512, 256, 128))
    out_bytes = jnp.dtype(out_dtype).itemsize
    row_bytes = dim * x2.dtype.itemsize + bn * out_bytes
    bm = _row_tile(m, row_bytes, _VMEM_BUDGET - 2 * dim * bn * 2)

    has_bias = b is not None
    in_specs = [
        pl.BlockSpec((bm, dim), lambda i, j: (i, 0)),
        pl.BlockSpec((1, dim), lambda i, j: (0, 0)),
        pl.BlockSpec((1, dim), lambda i, j: (0, 0)),
        pl.BlockSpec((dim, bn), lambda i, j: (0, j)),
    ]
    args = [x2,
            gamma.reshape(1, dim).astype(jnp.float32),
            beta.reshape(1, dim).astype(jnp.float32),
            w_bf]
    if has_bias:
        in_specs.append(pl.BlockSpec((1, bn), lambda i, j: (0, j)))
        args.append(b.reshape(1, n).astype(jnp.float32))

    out = pl.pallas_call(
        functools.partial(_ln_linear_kernel, eps=eps, activation=activation,
                          has_bias=has_bias),
        out_shape=jax.ShapeDtypeStruct((m, n), out_dtype),
        grid=(pl.cdiv(m, bm), n // bn),
        in_specs=in_specs,
        out_specs=pl.BlockSpec((bm, bn), lambda i, j: (i, j)),
        compiler_params=pltpu.CompilerParams(
            dimension_semantics=("parallel", "parallel")),
    )(*args)
    return out.reshape(shape[:-1] + (n,))


# ----------------------------------------------------------------------------
# Plain tiled linear (used by the demo `fn`); weight-resident fast path plus a
# K-loop fallback with an f32 VMEM accumulator.
# ----------------------------------------------------------------------------
def _linear_kernel(*refs, activation, has_bias):
    if has_bias:
        x_ref, w_ref, bias_ref, o_ref = refs
    else:
        x_ref, w_ref, o_ref = refs
        bias_ref = None
    r = jnp.dot(x_ref[...], w_ref[...], preferred_element_type=jnp.float32)
    if has_bias:
        r = r + bias_ref[...]
    if activation == "gelu":
        r = jax.nn.gelu(r, approximate=True)
    o_ref[...] = r.astype(o_ref.dtype)


def _linear_kloop_kernel(*refs, activation, has_bias):
    if has_bias:
        x_ref, w_ref, bias_ref, o_ref, acc_ref = refs
    else:
        x_ref, w_ref, o_ref, acc_ref = refs
        bias_ref = None

    @pl.when(pl.program_id(2) == 0)
    def _():
        acc_ref[...] = jnp.zeros_like(acc_ref)

    acc_ref[...] += jnp.dot(x_ref[...], w_ref[...],
                            preferred_element_type=jnp.float32)

    @pl.when(pl.program_id(2) == pl.num_programs(2) - 1)
    def _():
        r = acc_ref[...]
        if has_bias:
            r = r + bias_ref[...]
        if activation == "gelu":
            r = jax.nn.gelu(r, approximate=True)
        o_ref[...] = r.astype(o_ref.dtype)


def pallas_linear(x, w, b=None, activation="none", out_dtype=jnp.float32):
    """act(x @ w + b).  x: (..., K), w: (K, N), b: (N,) or None."""
    shape = x.shape
    k = shape[-1]
    k2, n = w.shape
    assert k == k2
    x2 = x.reshape(-1, k)
    m = x2.shape[0]
    # bf16 MXU operands; skip the cast when the producer already emitted bf16.
    x_bf = x2 if x2.dtype == jnp.bfloat16 else x2.astype(jnp.bfloat16)
    w_bf = w if w.dtype == jnp.bfloat16 else w.astype(jnp.bfloat16)
    has_bias = b is not None
    out_bytes = jnp.dtype(out_dtype).itemsize

    w_bytes = k * n * 2
    if w_bytes <= _WEIGHT_RESIDENT_BYTES:
        bn, bk = n, k                      # whole weight resident, no K grid axis
    else:
        bn = _pick_divisor(n, (512, 256, 128))
        bk = _pick_divisor(k, (1024, 512, 256, 128))

    row_bytes = bk * 2 + bn * out_bytes
    bm = _row_tile(m, row_bytes, _VMEM_BUDGET - 2 * bk * bn * 2)

    args = [x_bf, w_bf]
    bias_arg = [b.reshape(1, n).astype(jnp.float32)] if has_bias else []

    if bk == k:
        in_specs = [pl.BlockSpec((bm, k), lambda i, j: (i, 0)),
                    pl.BlockSpec((k, bn), lambda i, j: (0, j))]
        if has_bias:
            in_specs.append(pl.BlockSpec((1, bn), lambda i, j: (0, j)))
        out = pl.pallas_call(
            functools.partial(_linear_kernel, activation=activation,
                              has_bias=has_bias),
            out_shape=jax.ShapeDtypeStruct((m, n), out_dtype),
            grid=(pl.cdiv(m, bm), n // bn),
            in_specs=in_specs,
            out_specs=pl.BlockSpec((bm, bn), lambda i, j: (i, j)),
            compiler_params=pltpu.CompilerParams(
                dimension_semantics=("parallel", "parallel")),
        )(*args, *bias_arg)
    else:
        in_specs = [pl.BlockSpec((bm, bk), lambda i, j, kk: (i, kk)),
                    pl.BlockSpec((bk, bn), lambda i, j, kk: (kk, j))]
        if has_bias:
            in_specs.append(pl.BlockSpec((1, bn), lambda i, j, kk: (0, j)))
        out = pl.pallas_call(
            functools.partial(_linear_kloop_kernel, activation=activation,
                              has_bias=has_bias),
            out_shape=jax.ShapeDtypeStruct((m, n), out_dtype),
            grid=(pl.cdiv(m, bm), n // bn, k // bk),
            in_specs=in_specs,
            out_specs=pl.BlockSpec((bm, bn), lambda i, j, kk: (i, j)),
            scratch_shapes=[pltpu.VMEM((bm, bn), jnp.float32)],
            compiler_params=pltpu.CompilerParams(
                dimension_semantics=("parallel", "parallel", "arbitrary")),
        )(*args, *bias_arg)
    return out.reshape(shape[:-1] + (n,))


# ----------------------------------------------------------------------------
# Demo `fn`: FeedForward (Linear -> GELU -> Linear), bf16 weights stored once,
# with a fused-PreNorm entry point.
# ----------------------------------------------------------------------------
class PallasFeedForward:
    supports_prenorm_fusion = True

    def __init__(self, w1, b1, w2, b2):
        self.dim = w1.shape[0]
        self.w1 = w1.astype(jnp.bfloat16)   # cast once at construction
        self.w2 = w2.astype(jnp.bfloat16)
        self.b1 = None if b1 is None else b1.astype(jnp.float32)
        self.b2 = None if b2 is None else b2.astype(jnp.float32)

    def __call__(self, x, prenorm=None):
        if prenorm is not None and self.dim <= _FUSE_LN_MAX_DIM:
            gamma, beta, eps = prenorm
            h = pallas_ln_linear(x, gamma, beta, self.w1, self.b1, eps=eps,
                                 activation="gelu", out_dtype=jnp.bfloat16)
        else:
            if prenorm is not None:          # large-dim fallback: LN emits bf16
                gamma, beta, eps = prenorm
                x = pallas_layernorm(x, gamma, beta, eps, out_dtype=jnp.bfloat16)
            h = pallas_linear(x, self.w1, self.b1, activation="gelu",
                              out_dtype=jnp.bfloat16)
        return pallas_linear(h, self.w2, self.b2, activation="none",
                             out_dtype=jnp.float32)


# ----------------------------------------------------------------------------
# PreNorm module (matches the PyTorch reference semantics)
# ----------------------------------------------------------------------------
class PreNorm:
    """forward(x, **kwargs) = fn(LayerNorm(x), **kwargs).
    If `fn` advertises PreNorm fusion, the LayerNorm is folded into fn's first
    matmul; otherwise a standalone LayerNorm kernel feeds the generic `fn`."""

    def __init__(self, dim, fn, eps=1e-5):
        self.dim = dim
        self.eps = eps
        self.gamma = jnp.ones((dim,), jnp.float32)     # nn.LayerNorm default init
        self.beta = jnp.zeros((dim,), jnp.float32)
        self.fn = fn

    def __call__(self, x, **kwargs):
        if getattr(self.fn, "supports_prenorm_fusion", False):
            return self.fn(x, prenorm=(self.gamma, self.beta, self.eps), **kwargs)
        return self.fn(pallas_layernorm(x, self.gamma, self.beta, self.eps),
                       **kwargs)


# ----------------------------------------------------------------------------
# Demo / self-test
# ----------------------------------------------------------------------------
if __name__ == "__main__":
    # Small but lane-dense shapes (feature dims are multiples of 128).
    b, n_tok, dim, hidden = 2, 8, 128, 256
    key = jax.random.PRNGKey(0)
    kx, kw1, kw2, kb1, kb2 = jax.random.split(key, 5)
    x = jax.random.normal(kx, (b, n_tok, dim), jnp.float32)
    w1 = jax.random.normal(kw1, (dim, hidden), jnp.float32) / jnp.sqrt(float(dim))
    b1 = 0.1 * jax.random.normal(kb1, (hidden,), jnp.float32)
    w2 = jax.random.normal(kw2, (hidden, dim), jnp.float32) / jnp.sqrt(float(hidden))
    b2 = 0.1 * jax.random.normal(kb2, (dim,), jnp.float32)

    # PreNorm wrapping a FeedForward (fused LN + first linear path).
    ff = PallasFeedForward(w1, b1, w2, b2)
    prenorm = PreNorm(dim, ff)
    out = jax.block_until_ready(prenorm(x))
    assert out.shape == (b, n_tok, dim), out.shape
    assert bool(jnp.all(jnp.isfinite(out)))

    # Pure-JAX f32 reference; loose tol reflects bf16 MXU operands.
    mu = x.mean(-1, keepdims=True)
    var = ((x - mu) ** 2).mean(-1, keepdims=True)
    xn = (x - mu) / jnp.sqrt(var + 1e-5)
    href = jax.nn.gelu(xn.reshape(-1, dim) @ w1 + b1, approximate=True)
    ref = (href @ w2 + b2).reshape(x.shape)
    assert jnp.allclose(out, ref, atol=5e-2, rtol=5e-2), \
        float(jnp.max(jnp.abs(out - ref)))

    # Generic-fn path (no fusion): PreNorm around identity == plain LayerNorm.
    ident = PreNorm(dim, lambda z: z)
    ln_out = jax.block_until_ready(ident(x))
    assert ln_out.shape == x.shape and ln_out.dtype == jnp.float32
    assert jnp.allclose(ln_out, xn, atol=1e-4, rtol=1e-4), \
        float(jnp.max(jnp.abs(ln_out - xn)))

    print("KERNEL_OK")
</pallas_src>

<mosaic_0001>
module attributes {stable_mosaic.version = 11 : i64} {
  func.func @_ln_linear_kernel(%arg0: i32, %arg1: i32, %arg2: memref<8x128xf32, #tpu.memory_space<vmem>>, %arg3: memref<1x128xf32, #tpu.memory_space<vmem>>, %arg4: memref<1x128xf32, #tpu.memory_space<vmem>>, %arg5: memref<128x256xbf16, #tpu.memory_space<vmem>>, %arg6: memref<1x256xf32, #tpu.memory_space<vmem>>, %arg7: memref<8x256xbf16, #tpu.memory_space<vmem>>) attributes {dimension_semantics = [#tpu.dimension_semantics<parallel>, #tpu.dimension_semantics<parallel>], iteration_bounds = array<i64: 2, 1>, scalar_prefetch = 0 : i64, scratch_operands = 0 : i64, tpu.core_type = #tpu.core_type<tc>, window_params = [{transform_indices = @transform_0, window_bounds = array<i64: 8, 128>}, {pipeline_mode = #tpu.pipeline_mode<synchronous>, transform_indices = @transform_1, window_bounds = array<i64: 1, 128>}, {pipeline_mode = #tpu.pipeline_mode<synchronous>, transform_indices = @transform_2, window_bounds = array<i64: 1, 128>}, {transform_indices = @transform_3, window_bounds = array<i64: 128, 256>}, {transform_indices = @transform_4, window_bounds = array<i64: 1, 256>}, {transform_indices = @transform_5, window_bounds = array<i64: 8, 256>}]} {
    %c0 = arith.constant 0 : index
    %c0_0 = arith.constant 0 : index
    %0 = vector.load %arg2[%c0, %c0_0] : memref<8x128xf32, #tpu.memory_space<vmem>>, vector<8x128xf32>
    %cst = arith.constant dense<0.000000e+00> : vector<8xf32>
    %1 = vector.multi_reduction <add>, %0, %cst [1] : vector<8x128xf32> to vector<8xf32>
    %2 = vector.shape_cast %1 : vector<8xf32> to vector<8x1xf32>
    %cst_1 = arith.constant 1.280000e+02 : f32
    %3 = vector.broadcast %cst_1 : f32 to vector<8x1xf32>
    %4 = arith.divf %2, %3 : vector<8x1xf32>
    %5 = vector.broadcast %4 : vector<8x1xf32> to vector<8x128xf32>
    %6 = arith.subf %0, %5 : vector<8x128xf32>
    %7 = arith.mulf %6, %6 : vector<8x128xf32>
    %cst_2 = arith.constant dense<0.000000e+00> : vector<8xf32>
    %8 = vector.multi_reduction <add>, %7, %cst_2 [1] : vector<8x128xf32> to vector<8xf32>
    %9 = vector.shape_cast %8 : vector<8xf32> to vector<8x1xf32>
    %cst_3 = arith.constant 1.280000e+02 : f32
    %10 = vector.broadcast %cst_3 : f32 to vector<8x1xf32>
    %11 = arith.divf %9, %10 : vector<8x1xf32>
    %cst_4 = arith.constant 9.99999974E-6 : f32
    %12 = vector.broadcast %cst_4 : f32 to vector<8x1xf32>
    %13 = arith.addf %11, %12 : vector<8x1xf32>
    %14 = math.rsqrt %13 : vector<8x1xf32>
    %15 = vector.broadcast %14 : vector<8x1xf32> to vector<8x128xf32>
    %16 = arith.mulf %6, %15 : vector<8x128xf32>
    %c0_5 = arith.constant 0 : index
    %c0_6 = arith.constant 0 : index
    %17 = vector.load %arg3[%c0_5, %c0_6] : memref<1x128xf32, #tpu.memory_space<vmem>>, vector<1x128xf32>
    %18 = vector.broadcast %17 : vector<1x128xf32> to vector<8x128xf32>
    %19 = arith.mulf %16, %18 : vector<8x128xf32>
    %c0_7 = arith.constant 0 : index
    %c0_8 = arith.constant 0 : index
    %20 = vector.load %arg4[%c0_7, %c0_8] : memref<1x128xf32, #tpu.memory_space<vmem>>, vector<1x128xf32>
    %21 = vector.broadcast %20 : vector<1x128xf32> to vector<8x128xf32>
    %22 = arith.addf %19, %21 : vector<8x128xf32>
    %23 = arith.truncf %22 : vector<8x128xf32> to vector<8x128xbf16>
    %c0_9 = arith.constant 0 : index
    %c0_10 = arith.constant 0 : index
    %24 = vector.load %arg5[%c0_9, %c0_10] : memref<128x256xbf16, #tpu.memory_space<vmem>>, vector<128x256xbf16>
    %cst_11 = arith.constant dense<0.000000e+00> : vector<8x256xf32>
    %25 = tpu.matmul %23, %24, %cst_11 {dimension_numbers = #tpu.dot_dimension_numbers<[1], [0], [0], [1], [0, 0, 1, 1], [], []>} : vector<8x128xbf16>, vector<128x256xbf16>, vector<8x256xf32> -> vector<8x256xf32>
    %c0_12 = arith.constant 0 : index
    %c0_13 = arith.constant 0 : index
    %26 = vector.load %arg6[%c0_12, %c0_13] : memref<1x256xf32, #tpu.memory_space<vmem>>, vector<1x256xf32>
    %27 = vector.broadcast %26 : vector<1x256xf32> to vector<8x256xf32>
    %28 = arith.addf %25, %27 : vector<8x256xf32>
    %29 = arith.mulf %28, %28 : vector<8x256xf32>
    %30 = arith.mulf %28, %29 : vector<8x256xf32>
    %cst_14 = arith.constant 4.471500e-02 : f32
    %31 = vector.broadcast %cst_14 : f32 to vector<8x256xf32>
    %32 = arith.mulf %31, %30 : vector<8x256xf32>
    %33 = arith.addf %28, %32 : vector<8x256xf32>
    %cst_15 = arith.constant 0.797884583 : f32
    %34 = vector.broadcast %cst_15 : f32 to vector<8x256xf32>
    %35 = arith.mulf %34, %33 : vector<8x256xf32>
    %36 = math.tanh %35 : vector<8x256xf32>
    %cst_16 = arith.constant 1.000000e+00 : f32
    %37 = vector.broadcast %cst_16 : f32 to vector<8x256xf32>
    %38 = arith.addf %37, %36 : vector<8x256xf32>
    %cst_17 = arith.constant 5.000000e-01 : f32
    %39 = vector.broadcast %cst_17 : f32 to vector<8x256xf32>
    %40 = arith.mulf %39, %38 : vector<8x256xf32>
    %41 = arith.mulf %28, %40 : vector<8x256xf32>
    %42 = arith.truncf %41 : vector<8x256xf32> to vector<8x256xbf16>
    %c0_18 = arith.constant 0 : index
    %c0_19 = arith.constant 0 : index
    %43 = vector.load %arg7[%c0_18, %c0_19] : memref<8x256xbf16, #tpu.memory_space<vmem>>, vector<8x256xbf16>
    tpu.vector_store %arg7[%c0_18, %c0_19], %42 {strides = array<i32>} : memref<8x256xbf16, #tpu.memory_space<vmem>>, vector<8x256xbf16>,
    return
  }
  func.func @transform_0(%arg0: i32, %arg1: i32) -> (i32, i32) {
    %c0_i32 = arith.constant 0 : i32
    %c0_i32_0 = arith.constant 0 : i32
    return %arg0, %c0_i32 : i32, i32
  }
  func.func @transform_1(%arg0: i32, %arg1: i32) -> (i32, i32) {
    %c0_i32 = arith.constant 0 : i32
    %c0_i32_0 = arith.constant 0 : i32
    %c0_i32_1 = arith.constant 0 : i32
    return %c0_i32, %c0_i32_0 : i32, i32
  }
  func.func @transform_2(%arg0: i32, %arg1: i32) -> (i32, i32) {
    %c0_i32 = arith.constant 0 : i32
    %c0_i32_0 = arith.constant 0 : i32
    %c0_i32_1 = arith.constant 0 : i32
    return %c0_i32, %c0_i32_0 : i32, i32
  }
  func.func @transform_3(%arg0: i32, %arg1: i32) -> (i32, i32) {
    %c0_i32 = arith.constant 0 : i32
    %c0_i32_0 = arith.constant 0 : i32
    return %c0_i32, %arg1 : i32, i32
  }
  func.func @transform_4(%arg0: i32, %arg1: i32) -> (i32, i32) {
    %c0_i32 = arith.constant 0 : i32
    %c0_i32_0 = arith.constant 0 : i32
    return %c0_i32, %arg1 : i32, i32
  }
  func.func @transform_5(%arg0: i32, %arg1: i32) -> (i32, i32) {
    %c0_i32 = arith.constant 0 : i32
    return %arg0, %arg1 : i32, i32
  }
}

</mosaic_0001>

<bundles_post_ra>
// kernel: tpu_custom_call.1
= control target key start
LH: loop header
LB: loop body
LE: loop exit
PB: predicated region body
PF: predicated region fallthrough
CT: control target
= control target key end

     0   :  { %10 = vsyncpa [#allocation3], 0  ;;  %s1180_s0 = inlined_call_operand.hbm [shape: f32[16,128], index: 0, kind: input, shape index: {}]   ;;  %s1181_s1 = inlined_call_operand.vmem [shape: f32[1,128], index: 1, kind: input, shape index: {}]   ;;  %s1182_s2 = inlined_call_operand.vmem [shape: f32[1,128], index: 2, kind: input, shape index: {}]   ;;  %s1183_s3 = inlined_call_operand.hbm [shape: bf16[128,256], index: 3, kind: input, shape index: {}]   ;;  %s1184_s4 = inlined_call_operand.vmem [shape: f32[1,256], index: 4, kind: input, shape index: {}]   ;;  %s1185_s5 = inlined_call_operand.hbm [shape: bf16[16,256], index: 5, kind: output, shape index: {}]  }
   0x1   :  { %12 = vsyncpa [#allocation3 + $0x1], 0 }
   0x2   :  { %13 = vsyncpa [#allocation6], 0 }
   0x3   :  { %14 = vsyncpa [#allocation4], 0 }
   0x4   :  { %16 = vsyncpa [#allocation4 + $0x1], 0  ;;  %s953_s18 = smov 0   ;;  %s955_s19 = smov 0  }
   0x5   :  { %s957_s20 = smov 0   ;;  %s959_s21 = smov 0  }
   0x6   :  { %s961_s22 = smov 0   ;;  %s963_s23 = smov 0  }
   0x7 LB: > { %s627_s24 = sadd.s32 4294967295, %s915_s23   ;;  %s628_s25 = sadd.s32 4294967294, %s915_s23   ;;  %s915_s23 = sphi %s963_s23, %s22_s23   ;;  %s911_s22 = sphi %s961_s22, %s1209_s22   ;;  %s907_s21 = sphi %s959_s21, %s1208_s21   ;;  %s903_s20 = sphi %s957_s20, %s1207_s20   ;;  %s899_s19 = sphi %s955_s19, %s1206_s19   ;;  %s895_s18 = sphi %s953_s18, %s1205_s18  }
   0x8   : > { %p54_p0 = scmp.ne.s32.totalorder %s899_s19, %s895_s18  ;;  %p987_p1 = scmp.eq.s32.totalorder %s627_s24, 0 }
   0x9   : > { %p991_p2 = scmp.eq.s32.totalorder %s627_s24, 1  ;;  %p180_p3 = scmp.eq.s32.totalorder %s628_s25, 1 }
   0xa   : > { %s1190_s26 = scalar_select %p987_p1, 1, 0 }
   0xb   : > { %s1191_s27 = scalar_select %p991_p2, 1, 0 }
   0xc   : > { %p997_p4 = por %p987_p1, %p54_p0  ;;  %p629_p5 = scmp.ge.s32.totalorder %s915_s23, 1 }
   0xd   : > { %p1002_p6 = por %p180_p3, %p54_p0  ;;  %p187_p7 = scmp.lt.s32.totalorder %s915_s23, 3 }
   0xe   : > { %s1192_s28 = scalar_select %p997_p4, 1, 0 }
   0xf   : > { %s1193_s29 = scalar_select %p1002_p6, 1, 0 }
  0x10   : > { %p1007_p8 = pnand %p629_p5, %p187_p7  ;;  %s917_s6 = smov [#allocation5]  }
  0x11   : > { %s208_s7 = sshll.u32 %s917_s6, 4  ;;  %s34_s9 = sadd.s32 1, %s911_s22  ;;  %s209_s7 = int_to_ptr.vmem [resolvable:$true] %s208_s7 }
  0x12   : > { %s1194_s30 = scalar_select %p1007_p8, 1, 0 }
  0x13   : > { %p673_p9 = pneg %p1007_p8  ;;  %s771_s12 = scalar_lea.hbm %s1183_s3, 2048 }
  0x14   : > { %p772_p12 = scmp.ne.s32.totalorder %s1183_s3, %s771_s12  ;;  %p778_p5 = scmp.lt.u32.totalorder %s771_s12, %s1183_s3 }
  0x15   : > { %p1016_p11 = pnand %p673_p9, %p987_p1 }
  0x17   : > { %p773_p13 = pneg %p1016_p11 }
  0x19   : > { %p774_p0 = pnand %p773_p13, %p772_p12 }
  0x1b   : > { %p775_p3 = pneg %p774_p0 }
  0x1d   : > { %p780_p7 = pnand %p778_p5, %p775_p3 }
  0x1f   : > { %783 = shalt.err (!%p780_p7)
}
  0x20   : > { %s784_s17 = scalar_lea.vmem %s209_s7, 2048  ;;  %p792_p1 = scmp.lt.s32.totalorder %s209_s7, %s209_s7 }
  0x21   : > { %p785_p9 = scmp.ne.s32.totalorder %s209_s7, %s784_s17  ;;  %p793_p4 = scmp.lt.s32.totalorder %s784_s17, %s784_s17 }
  0x23   : > { %p787_p10 = pnand %p785_p9, %p773_p13  ;;  %p794_p8 = por %p793_p4, %p792_p1 }
  0x25   : > { %p788_p6 = pneg %p787_p10 }
  0x27   : > { %p795_p2 = pnand %p794_p8, %p788_p6 }
  0x29   : > { %798 = shalt.err (!%p795_p2)
}
  0x2a   : > { %s918_s24 = smov 128   ;;  %s919_s25 = smov 8  }
  0x2b   : > { %676 = dma.hbm_to_vmem [thread:$0]  (!%p1016_p11), %s1183_s3, 2048, %s209_s7, [#allocation6], %s918_s24, %s918_s24, %s919_s25  }
  0x2c   : > { %p36_p1 = scmp.ge.s32.totalorder %s34_s9, 2  ;;  %s41_s11 = sadd.s32 1, %s903_s20 }
  0x2d   : > { %p48_p2 = scmp.ne.s32.totalorder %s903_s20, %s899_s19  ;;  %p49_p4 = scmp.eq.s32.totalorder %s915_s23, 0 }
  0x2e   : > { %s1211_s9 = smov (%p36_p1, %s34_s9), 0  ;;  %p1197_p8 = scmp.ne.s32.totalorder %s1191_s27, 0 }
  0x2f   : > { %p1043_p6 = por %p49_p4, %p48_p2  ;;  %s38_s8 = ssub.s32 %s911_s22, %s1211_s9 }
  0x30   : > { %p1049_p10 = por %p1197_p8, %p48_p2  ;;  %p686_p12 = scmp.lt.s32.totalorder %s915_s23, 2 }
  0x31   : > { %p39_p11 = scmp.eq.s32.totalorder %s38_s8, 0  ;;  %s230_s7 = sand.u32 1, %s903_s20  }
  0x32   : > { %s633_s14 = sshll.u32 %s230_s7, 3  ;;  %s634_s16 = sshll.u32 %s911_s22, 7 }
  0x33   : > { %s1058_s15 = scalar_select %p39_p11, %s903_s20, %s41_s11  }
  0x34   : > { %s1064_s25 = scalar_lea.hbm %s1180_s0, %s634_s16  ;;  %s234_s27 = scalar_lea.vmem [#allocation2], %s633_s14 }
  0x35   : > { %s241_s6 = sshll.u32 %s234_s27, 4  ;;  %p1070_p13 = pnand %p686_p12, %p1043_p6  ;;  %s1066_s6 = int_to_ptr.vmem [resolvable:$true] %s241_s6 }
  0x36   : > { %s231_s11 = scalar_lea.sflag [#allocation3], %s230_s7  ;;  %s799_s8 = scalar_lea.hbm %s1064_s25, 128 }
  0x37   : > { %p800_p0 = scmp.ne.s32.totalorder %s1064_s25, %s799_s8  ;;  %p801_p3 = pneg %p1070_p13 }
  0x38   : > { %s804_s17 = scalar_lea.hbm %s1180_s0, 256  ;;  %p805_p9 = scmp.lt.u32.totalorder %s1064_s25, %s1180_s0 }
  0x39   : > { %p802_p5 = pnand %p801_p3, %p800_p0  ;;  %p806_p1 = scmp.lt.u32.totalorder %s804_s17, %s799_s8 }
  0x3a   : > { %p808_p4 = scmp.lt.u32.totalorder %s799_s8, %s1064_s25 }
  0x3b   : > { %p803_p7 = pneg %p802_p5  ;;  %p807_p2 = por %p806_p1, %p805_p9 }
  0x3d   : > { %p809_p6 = por %p808_p4, %p807_p2 }
  0x3f   : > { %p810_p8 = pnand %p809_p6, %p803_p7 }
  0x41   : > { %813 = shalt.err (!%p810_p8)
}
  0x42   : > { %s814_s7 = scalar_lea.vmem %s1066_s6, 128  ;;  %s920_s27 = smov [#allocation2]  }
  0x43   : > { %p815_p12 = scmp.ne.s32.totalorder %s1066_s6, %s814_s7  ;;  %s819_s14 = sshll.u32 %s920_s27, 4  ;;  %s820_s14 = int_to_ptr.vmem [resolvable:$false] %s819_s14 }
  0x44   : > { %s821_s16 = scalar_lea.vmem %s820_s14, 256  ;;  %p822_p5 = scmp.lt.s32.totalorder %s1066_s6, %s820_s14 }
  0x45   : > { %p817_p11 = pnand %p815_p12, %p801_p3  ;;  %p823_p9 = scmp.lt.s32.totalorder %s821_s16, %s814_s7 }
  0x47   : > { %p818_p0 = pneg %p817_p11  ;;  %p824_p1 = por %p823_p9, %p822_p5 }
  0x49   : > { %p825_p2 = pnand %p824_p1, %p818_p0 }
  0x4b   : > { %828 = shalt.err (!%p825_p2)
}
  0x4c   : > { %680 = dma.hbm_to_vmem [thread:$0]  (!%p1070_p13), %s1064_s25, 128, %s1066_s6, %s231_s11  }
  0x4d   : > { %p1200_p7 = scmp.ne.s32.totalorder %s1194_s30, 0 }
  0x4e   : > { %s1102_s8 = sand.u32 (!%p1200_p7), 1, %s899_s19   ;;  %p1201_p3 = scmp.ne.s32.totalorder (!%p1200_p7), %s1192_s28, 0 }
  0x4f   : > { %250 = sbr.rel (%p1200_p7) target bundleno = 662 (0x296), region = 40  ;;  %s636_s17 = sshll.u32 (!%p1200_p7), %s1102_s8, 3 }
  0x50   : > { %s253_s12 = scalar_lea.sflag (!%p1200_p7), [#allocation3], %s1102_s8  ;;  %s256_s24 = scalar_lea.vmem (!%p1200_p7), [#allocation2], %s636_s17 }
  0x56   : > { %882 = dma.done.wait (%p1201_p3), %s253_s12, 128  }
  0x57   : > { %884 = vsyncadd (%p1201_p3), %s253_s12, 4294967168  ;;  %p1202_p13 = scmp.ne.s32.totalorder %s1190_s26, 0 }
  0x59   : > { %886 = dma.done.wait (%p1202_p13), [#allocation6], 2048  }
  0x5a   : > { %888 = vsyncadd (%p1202_p13), [#allocation6], 4294965248  ;;  %v299_v0 = vld [vmem:[%s256_s24] sm:$0xff]  ;;  %v741_v1 = vld [vmem:[#allocation5 + $0x4] ss:$8 sps:$4 sm:$0xff]   ;;  %v921_v16 = vmov 0   ;;  %v347_v32 = vlaneseq }
  0x5b   : > { %300 = vadd.xlane.f32.xlu0 %v299_v0  ;;  %v743_v2 = vld [vmem:[#allocation5] ss:$8 sps:$4 sm:$0xff]   ;;  %v744_v3 = vld [vmem:[#allocation5 + $0x14] ss:$8 sps:$4 sm:$0xff]   ;;  %437 = vmatprep.subr.bf16.mxu0 %v741_v1  ;;  %v746_v4 = vld [vmem:[#allocation5 + $0x10] ss:$8 sps:$4 sm:$0xff]  }
  0x5c   : > { %438 = vmatpush1.bf16.msra.mxu0 %v743_v2  ;;  %v747_v5 = vld [vmem:[#allocation5 + $0x24] ss:$8 sps:$4 sm:$0xff]   ;;  %v749_v10 = vld [vmem:[#allocation5 + $0x20] ss:$8 sps:$4 sm:$0xff]   ;;  %v750_v11 = vld [vmem:[#allocation5 + $0x34] ss:$8 sps:$4 sm:$0xff]   ;;  %469 = vmatprep.mubr.bf16.mxu0 %v921_v16 }
  0x5d   : > { %439 = vmatprep.subr.bf16.mxu0 %v744_v3  ;;  %v752_v12 = vld [vmem:[#allocation5 + $0x30] ss:$8 sps:$4 sm:$0xff]   ;;  %v753_v13 = vld [vmem:[#allocation5 + $0x44] ss:$8 sps:$4 sm:$0xff]   ;;  %v755_v14 = vld [vmem:[#allocation5 + $0x40] ss:$8 sps:$4 sm:$0xff]  }
  0x5e   : > { %v756_v15 = vld [vmem:[#allocation5 + $0x54] ss:$8 sps:$4 sm:$0xff]   ;;  %v758_v17 = vld [vmem:[#allocation5 + $0x50] ss:$8 sps:$4 sm:$0xff]   ;;  %v759_v18 = vld [vmem:[#allocation5 + $0x64] ss:$8 sps:$4 sm:$0xff]  }
  0x5f   : > { %v761_v19 = vld [vmem:[#allocation5 + $0x60] ss:$8 sps:$4 sm:$0xff]   ;;  %v762_v20 = vld [vmem:[#allocation5 + $0x74] ss:$8 sps:$4 sm:$0xff]   ;;  %v764_v21 = vld [vmem:[#allocation5 + $0x70] ss:$8 sps:$4 sm:$0xff]  }
  0x60   : > { %440 = vmatpush1.bf16.msra.mxu0 %v746_v4  ;;  %v639_v26 = vld [vmem:[%s1181_s1] ss:$0 sm:$0xff]  ;;  %v348_v33 = vshrl.u32 %v347_v32, 7  ;;  %s664_s11 = sshll.u32 %s907_s21, 7  ;;  %s290_s7 = scalar_lea.vmem [#allocation7], %s636_s17 }
  0x61   : > { %441 = vmatprep.subr.bf16.mxu0 %v747_v5  ;;  %v640_v28 = vld [vmem:[%s1182_s2] ss:$0 sm:$0xff]  ;;  %s522_s27 = sshll.u32 %s290_s7, 4  ;;  %s1131_s12 = scalar_lea.hbm %s1185_s5, %s664_s11  ;;  %s1133_s27 = int_to_ptr.vmem [resolvable:$true] %s522_s27 }
  0x62   : > { %v349_v34 = vsub.s32 0, %v348_v33  ;;  %v345_v35 = vld [vmem:[%s1184_s4] sm:$0x3]  ;;  %v353_v36 = vsub.s32 1, %v348_v33  ;;  %s506_s24 = scalar_lea.sflag [#allocation4], %s1102_s8  ;;  %s829_s26 = scalar_lea.vmem %s1133_s27, 128 }
  0x63   : > { %p830_p4 = scmp.ne.s32.totalorder %s1133_s27, %s829_s26  ;;  %s922_s21 = smov [#allocation7]  }
  0x64   : > { %442 = vmatpush1.bf16.msra.mxu0 %v749_v10  ;;  %v350_v37 = vrot.slane %v345_v35, %v349_v34  ;;  %v354_v38 = vrot.slane %v345_v35, %v353_v36  ;;  %s833_s17 = sshll.u32 %s922_s21, 4  ;;  %s834_s17 = int_to_ptr.vmem [resolvable:$false] %s833_s17 }
  0x65   : > { %443 = vmatprep.subr.bf16.mxu0 %v750_v11  ;;  %p831_p6 = pnand %p830_p4, %p1049_p10  ;;  %s835_s28 = scalar_lea.vmem %s834_s17, 256 }
  0x66   : > { %p836_p12 = scmp.lt.s32.totalorder %s1133_s27, %s834_s17  ;;  %p837_p11 = scmp.lt.s32.totalorder %s835_s28, %s829_s26 }
  0x67   : > { %p832_p8 = pneg %p831_p6 }
  0x68   : > { %444 = vmatpush1.bf16.msra.mxu0 %v752_v12  ;;  %p838_p0 = por %p837_p11, %p836_p12 }
  0x69   : > { %445 = vmatprep.subr.bf16.mxu0 %v753_v13 }
  0x6a   : > { %p839_p5 = pnand %p838_p0, %p832_p8 }
  0x6c   : > { %446 = vmatpush1.bf16.msra.mxu0 %v755_v14 }
  0x6d   : > { %447 = vmatprep.subr.bf16.mxu0 %v756_v15 }
  0x70   : > { %448 = vmatpush1.bf16.msra.mxu0 %v758_v17 }
  0x71   : > { %449 = vmatprep.subr.bf16.mxu0 %v759_v18 }
  0x74   : > { %450 = vmatpush1.bf16.msra.mxu0 %v761_v19 }
  0x75   : > { %451 = vmatprep.subr.bf16.mxu0 %v762_v20 }
  0x78   : > { %452 = vmatpush1.bf16.msra.mxu0 %v764_v21 }
  0xe8   : > { %v301_v6 = vpop.xlane.xlu0 %300 }
  0xe9   : > { %v303_v7 = vmul.f32 0.0078125, %v301_v6 }
  0xeb   : > { %v304_v8 = vsub.f32 %v299_v0, %v303_v7 }
  0xed   : > { %v305_v9 = vmul.f32 %v304_v8, %v304_v8 }
  0xef   : > { %306 = vadd.xlane.f32.xlu0 %v305_v9 }
 0x17c   : > { %v307_v22 = vpop.xlane.xlu0 %306 }
 0x17d   : > { %v308_v23 = vmul.f32 0.0078125, %v307_v22 }
 0x17f   : > { %v309_v24 = vadd.f32 1e-05, %v308_v23 }
 0x181   : > { %765 = vrsqrt.f32 %v309_v24 }
 0x18b   : > { %v766_v25 = vpop.eup %765 }
 0x18c   : > { %v311_v27 = vmul.f32 %v766_v25, %v304_v8 }
 0x18e   : > { %v319_v29 = vmul.f32 %v639_v26, %v311_v27 }
 0x190   : > { %v327_v30 = vadd.f32 %v640_v28, %v319_v29 }
 0x192   : > { %v328_v31 = vpack.c.bf16 %v327_v30, %v327_v30 }
 0x194   : > { %470 = vmatmul.mubr.bf16.vlgmr.msra.gmra.mrb[0].mxu0 %v328_v31 }
 0x267   : > { %v471_v39 = vpop.f32.mrb[0].mxu0 }
 0x268   : > { %v472_v40 = vadd.f32 %v471_v39, %v350_v37  ;;  %v473_v41 = vpop.f32.mrb[1].mxu0 }
 0x269   : > { %v474_v42 = vadd.f32 %v473_v41, %v354_v38  ;;  %v475_v43 = vpop.f32.mrb[2].mxu0 }
 0x26a   : > { %v478_v44 = vmul.f32 %v472_v40, %v472_v40  ;;  %v476_v45 = vpop.f32.mrb[3].mxu0 }
 0x26b   : > { %v479_v46 = vmul.f32 %v474_v42, %v474_v42 }
 0x26c   : > { %v480_v47 = vmul.f32 %v478_v44, %v472_v40 }
 0x26d   : > { %v481_v48 = vmul.f32 %v479_v46, %v474_v42 }
 0x26e   : > { %v482_v49 = vmul.f32 0.044715, %v480_v47 }
 0x26f   : > { %v483_v50 = vmul.f32 0.044715, %v481_v48 }
 0x270   : > { %v484_v51 = vadd.f32 %v482_v49, %v472_v40 }
 0x271   : > { %v485_v52 = vadd.f32 %v483_v50, %v474_v42 }
 0x272   : > { %v486_v53 = vmul.f32 0.7978846, %v484_v51 }
 0x273   : > { %v487_v54 = vmul.f32 0.7978846, %v485_v52 }
 0x274   : > { %767 = vtanh.f32 %v486_v53 }
 0x275   : > { %769 = vtanh.f32 %v487_v54 }
 0x27e   : > { %v768_v55 = vpop.eup %767 }
 0x27f   : > { %v770_v56 = vpop.eup %769  ;;  %v490_v57 = vadd.f32 1.0, %v768_v55 }
 0x280   : > { %v491_v58 = vadd.f32 1.0, %v770_v56 }
 0x281   : > { %v492_v59 = vmul.f32 0.5, %v490_v57 }
 0x282   : > { %v493_v60 = vmul.f32 0.5, %v491_v58 }
 0x283   : > { %v494_v61 = vmul.f32 %v492_v59, %v472_v40 }
 0x284   : > { %v495_v62 = vmul.f32 %v493_v60, %v474_v42 }
 0x286   : > { %v663_v63 = vpack.c.bf16 %v495_v62, %v494_v61 }
 0x288   : > { %504 = vst [vmem:[%s290_s7] sm:$0xff] %v663_v63 }
 0x289   : > { %842 = shalt.err (!%p839_p5)
}
 0x28a   : > { %s843_s8 = scalar_lea.hbm %s1131_s12, 128  ;;  %s847_s6 = scalar_lea.hbm %s1185_s5, 256 }
 0x28b   : > { %p844_p9 = scmp.ne.s32.totalorder %s1131_s12, %s843_s8  ;;  %p848_p7 = scmp.lt.u32.totalorder %s1131_s12, %s1185_s5 }
 0x28c   : > { %p849_p3 = scmp.lt.u32.totalorder %s847_s6, %s843_s8  ;;  %p851_p4 = scmp.lt.u32.totalorder %s843_s8, %s1131_s12 }
 0x28d   : > { %p845_p1 = pnand %p844_p9, %p1049_p10 }
 0x28e   : > { %p850_p13 = por %p849_p3, %p848_p7 }
 0x28f   : > { %p846_p2 = pneg %p845_p1 }
 0x290   : > { %p852_p6 = por %p851_p4, %p850_p13 }
 0x292   : > { %p853_p8 = pnand %p852_p6, %p846_p2 }
 0x294   : > { %856 = shalt.err (!%p853_p8)
}
 0x295   : > { %671 = dma.vmem_to_hbm [thread:$0]  (%p1049_p10), %s1133_s27, 128, %s1131_s12, %s506_s24  }
 0x296 PF: > { %s534_s7 = sand.u32 1, %s895_s18   ;;  %p1203_p12 = scmp.ne.s32.totalorder %s1193_s29, 0 }
 0x297   : > { %p1204_p11 = scmp.ge.s32.totalorder %s915_s23, 2  ;;  %s535_s14 = scalar_lea.sflag [#allocation4], %s534_s7 }
 0x299   : > { %p682_p0 = pnand %p1204_p11, %p1203_p12 }
 0x29b   : > { %890 = dma.done.wait (!%p682_p0), %s535_s14, 128  }
 0x29c   : > { %892 = vsyncadd (!%p682_p0), %s535_s14, 4294967168  ;;  %s22_s23 = sadd.s32 1, %s915_s23   ;;  %s1205_s18 = smov %s899_s19 }
 0x29d   : > { %p19_p5 = scmp.ge.s32.totalorder %s22_s23, 4   ;;  %s1206_s19 = smov %s903_s20 }
 0x29e   : > { %s1207_s20 = smov %s1058_s15  ;;  %s1208_s21 = smov %s911_s22 }
 0x29f   : > { %s1209_s22 = smov %s1211_s9  ;;  %21 = sbr.rel (!%p19_p5) target bundleno = 7 (0x7), region = 93 }
 0x2a6   :  { %540 = vsyncpa [#allocation3], 1 }
 0x2a7   :  { %542 = vsyncpa [#allocation3 + $0x1], 1 }
 0x2a8   :  { %543 = vsyncpa [#allocation6], 1 }
 0x2a9   :  { %544 = vsyncpa [#allocation4], 1 }
 0x2aa   :  { %546 = vsyncpa [#allocation4 + $0x1], 1 }

</bundles_post_ra>
